<compile_context>
chip_gen: v7x
topology: tpu7x:2x2x1
jax: 0.10.0
libtpu: 0.0.40
codegen_flags: <defaults>
</compile_context>

<pallas_src>
import jax
import jax.numpy as jnp
from jax import lax
from jax.experimental import pallas as pl
from jax.experimental.pallas import tpu as pltpu

MAX_FLOAT32 = 1e30


def _round_up(x, m):
    return (x + m - 1) // m * m


def _start_logits_kernel_masked(x_ref, w_ref, b_ref, pm_ref, o_ref):
    # x_ref : (tm, H)  activation rows (last grid step may be ragged)
    # w_ref : (8, H)   Linear weight; row 0 is real, rows 1..7 are zero
    # b_ref : (1, 1)   Linear bias
    # pm_ref: (1, tm)  p_mask for this row tile (lane-dense, f32)
    # o_ref : (1, tm)  start logits for this row tile (lane-dense)
    res = lax.dot_general(
        w_ref[...], x_ref[...],
        dimension_numbers=(((1,), (1,)), ((), ())),   # w @ x^T on the MXU
        preferred_element_type=jnp.float32,
    )                                                  # (8, tm) f32
    logits = res[0:1, :] + b_ref[...].astype(jnp.float32)      # (1, tm)
    pm = pm_ref[...]
    o_ref[...] = (logits * (1.0 - pm) - MAX_FLOAT32 * pm).astype(o_ref.dtype)


def _start_logits_kernel(x_ref, w_ref, b_ref, o_ref):
    # No-mask variant: avoids allocating/streaming a dummy zeros p_mask.
    res = lax.dot_general(
        w_ref[...], x_ref[...],
        dimension_numbers=(((1,), (1,)), ((), ())),
        preferred_element_type=jnp.float32,
    )                                                  # (8, tm) f32
    o_ref[...] = (res[0:1, :] + b_ref[...].astype(jnp.float32)).astype(o_ref.dtype)


def _pick_tile(M, H, itemsize, pack, tm):
    """Pick the row-tile size tm (multiple of the dtype's sublane packing)."""
    if tm is None:
        # v7x-aware VMEM budget for the double-buffered activation tile.
        budget = 24 * 2**20                           # safe default (v7x: 64 MiB phys)
        try:
            cap = int(pltpu.get_tpu_info().vmem_capacity_bytes)
            budget = max(8 * 2**20, min(32 * 2**20, cap // 2 - 8 * 2**20))
        except Exception:
            pass
        row_bytes = max(1, H * itemsize)
        tm = min(1024, budget // (2 * row_bytes))
        # Keep >= ~4 grid steps alive for megacore sharding when rows permit.
        if M >= 4 * 256 and tm > pl.cdiv(M, 4):
            tm = max(256, _round_up(pl.cdiv(M, 4), pack))
    tm = max(pack, (int(tm) // pack) * pack)
    if M >= pack:
        tm = min(tm, (M // pack) * pack)   # never larger than the row count
    else:
        tm = M                             # single tiny block == full array dim
    return tm


def pooler_start_logits(hidden_states, weight, bias, p_mask=None, *, tm=None):
    """hidden_states: [B, S, H]; weight: [1, H] (PyTorch Linear(H, 1) layout);
    bias: [1]; p_mask: optional [B, S] float (1.0 == masked).  Returns [B, S]."""
    B, S, H = hidden_states.shape
    M = B * S
    dtype = hidden_states.dtype
    itemsize = jnp.dtype(dtype).itemsize
    pack = {4: 8, 2: 16, 1: 32}.get(itemsize, 8)      # sublane packing per dtype

    tm = _pick_tile(M, H, itemsize, pack, tm)
    num_tiles = pl.cdiv(M, tm)            # ragged last block is handled by Pallas
    Mp = num_tiles * tm                   # only the tiny pm/out arrays use this

    x2d = hidden_states.reshape(M, H)     # streamed once, never padded/copied

    # (8, H) weight slab: row 0 is the real weight, rows 1..7 are zero, so the
    # MXU result's row 0 is exactly the per-row dot product.
    w8 = jnp.pad(weight.reshape(1, H).astype(dtype), ((0, 7), (0, 0)))
    b2d = bias.reshape(1, 1)

    tile_bytes = tm * H * itemsize
    vmem_limit = int(max(4 * 2**20, min(2 * tile_bytes + 4 * 2**20, 40 * 2**20)))

    cost = pl.CostEstimate(
        flops=2 * M * H,
        transcendentals=0,
        bytes_accessed=int(M * H * itemsize + 8 * H * itemsize
                           + Mp * itemsize + (0 if p_mask is None else Mp * 4)),
    )
    cparams = pltpu.CompilerParams(
        dimension_semantics=("parallel",),
        vmem_limit_bytes=vmem_limit,
    )

    x_spec = pl.BlockSpec((tm, H), lambda i: (i, 0))   # last dim == full H (no pad)
    w_spec = pl.BlockSpec((8, H), lambda i: (0, 0))    # resident
    b_spec = pl.BlockSpec((1, 1), lambda i: (0, 0))    # resident
    o_spec = pl.BlockSpec((1, tm), lambda i: (i, 0))   # lane-dense output tile

    if p_mask is None:
        out = pl.pallas_call(
            _start_logits_kernel,
            out_shape=jax.ShapeDtypeStruct((num_tiles, tm), dtype),
            grid_spec=pltpu.PrefetchScalarGridSpec(
                num_scalar_prefetch=0,
                grid=(num_tiles,),
                in_specs=[x_spec, w_spec, b_spec],
                out_specs=o_spec,
            ),
            compiler_params=cparams,
            cost_estimate=cost,
        )(x2d, w8, b2d)
    else:
        pm_flat = p_mask.reshape(M).astype(jnp.float32)
        if Mp != M:
            pm_flat = jnp.pad(pm_flat, (0, Mp - M))    # tiny: O(M) floats
        pm2d = pm_flat.reshape(num_tiles, tm)
        pm_spec = pl.BlockSpec((1, tm), lambda i: (i, 0))
        out = pl.pallas_call(
            _start_logits_kernel_masked,
            out_shape=jax.ShapeDtypeStruct((num_tiles, tm), dtype),
            grid_spec=pltpu.PrefetchScalarGridSpec(
                num_scalar_prefetch=0,
                grid=(num_tiles,),
                in_specs=[x_spec, w_spec, b_spec, pm_spec],
                out_specs=o_spec,
            ),
            compiler_params=cparams,
            cost_estimate=cost,
        )(x2d, w8, b2d, pm2d)

    # Rows beyond M in the last (ragged) tile are garbage and sliced off here.
    # TODO(synk): if cross-row reductions are ever added, mask those rows first.
    return out.reshape(-1)[:M].reshape(B, S)


def reference_start_logits(hidden_states, weight, bias, p_mask=None):
    """Pure-JAX reference matching the PyTorch forward."""
    x = jnp.einsum("bsh,oh->bso", hidden_states, weight,
                   precision=lax.Precision.HIGHEST)[..., 0] + bias[0]
    if p_mask is not None:
        x = x * (1.0 - p_mask) - MAX_FLOAT32 * p_mask
    return x


def _run_case(key, B, S, H, with_mask, tm=None):
    kx, kw, kb, km = jax.random.split(key, 4)
    # PyTorch Linear(H, 1) default init U(-1/sqrt(H), 1/sqrt(H)).
    bound = 1.0 / (H ** 0.5)
    weight = jax.random.uniform(kw, (1, H), jnp.float32, -bound, bound)
    bias = jax.random.uniform(kb, (1,), jnp.float32, -bound, bound)
    x = jax.random.normal(kx, (B, S, H), jnp.float32)
    p_mask = ((jax.random.uniform(km, (B, S)) > 0.7).astype(jnp.float32)
              if with_mask else None)

    out = jax.block_until_ready(pooler_start_logits(x, weight, bias, p_mask, tm=tm))
    ref = reference_start_logits(x, weight, bias, p_mask)
    assert out.shape == (B, S), f"bad shape {out.shape}"
    assert jnp.allclose(out, ref, atol=1e-3, rtol=1e-4), (
        f"mismatch B={B} S={S} H={H} mask={with_mask} tm={tm}")
    return out


if __name__ == "__main__":
    key = jax.random.PRNGKey(0)
    k1, k2, k3, k4 = jax.random.split(key, 4)
    _run_case(k1, B=2, S=8, H=32, with_mask=True)             # basic, auto tile
    _run_case(k2, B=2, S=8, H=32, with_mask=False)            # no-mask kernel variant
    _run_case(k3, B=3, S=5, H=48, with_mask=True)             # M=15: ragged last block
    _run_case(k4, B=2, S=137, H=96, with_mask=True, tm=64)    # multi-tile + ragged tail
    print("KERNEL_OK")
</pallas_src>

<mosaic_0001>
module attributes {stable_mosaic.version = 11 : i64} {
  func.func @_start_logits_kernel_masked(%arg0: i32, %arg1: memref<16x32xf32, #tpu.memory_space<vmem>>, %arg2: memref<8x32xf32, #tpu.memory_space<vmem>>, %arg3: memref<1x1xf32, #tpu.memory_space<vmem>>, %arg4: memref<1x16xf32, #tpu.memory_space<vmem>>, %arg5: memref<1x16xf32, #tpu.memory_space<vmem>>) attributes {dimension_semantics = [#tpu.dimension_semantics<parallel>], iteration_bounds = array<i64: 1>, scalar_prefetch = 0 : i64, scratch_operands = 0 : i64, tpu.core_type = #tpu.core_type<tc>, window_params = [{transform_indices = @transform_0, window_bounds = array<i64: 16, 32>}, {pipeline_mode = #tpu.pipeline_mode<synchronous>, transform_indices = @transform_1, window_bounds = array<i64: 8, 32>}, {pipeline_mode = #tpu.pipeline_mode<synchronous>, transform_indices = @transform_2, window_bounds = array<i64: 1, 1>}, {transform_indices = @transform_3, window_bounds = array<i64: 1, 16>}, {transform_indices = @transform_4, window_bounds = array<i64: 1, 16>}]} {
    %c0 = arith.constant 0 : index
    %c0_0 = arith.constant 0 : index
    %0 = vector.load %arg2[%c0, %c0_0] : memref<8x32xf32, #tpu.memory_space<vmem>>, vector<8x32xf32>
    %c0_1 = arith.constant 0 : index
    %c0_2 = arith.constant 0 : index
    %1 = vector.load %arg1[%c0_1, %c0_2] : memref<16x32xf32, #tpu.memory_space<vmem>>, vector<16x32xf32>
    %cst = arith.constant dense<0.000000e+00> : vector<8x16xf32>
    %2 = tpu.matmul %0, %1, %cst {dimension_numbers = #tpu.dot_dimension_numbers<[1], [1], [0], [0], [0, 0, 1, 0], [], []>} : vector<8x32xf32>, vector<16x32xf32>, vector<8x16xf32> -> vector<8x16xf32>
    %3 = vector.extract_strided_slice %2 {offsets = [0, 0], sizes = [1, 16], strides = [1, 1]} : vector<8x16xf32> to vector<1x16xf32>
    %c0_3 = arith.constant 0 : index
    %c0_4 = arith.constant 0 : index
    %4 = vector.load %arg3[%c0_3, %c0_4] : memref<1x1xf32, #tpu.memory_space<vmem>>, vector<1x1xf32>
    %5 = vector.broadcast %4 : vector<1x1xf32> to vector<1x16xf32>
    %6 = arith.addf %3, %5 : vector<1x16xf32>
    %c0_5 = arith.constant 0 : index
    %c0_6 = arith.constant 0 : index
    %7 = vector.load %arg4[%c0_5, %c0_6] : memref<1x16xf32, #tpu.memory_space<vmem>>, vector<1x16xf32>
    %cst_7 = arith.constant 1.000000e+00 : f32
    %8 = vector.broadcast %cst_7 : f32 to vector<1x16xf32>
    %9 = arith.subf %8, %7 : vector<1x16xf32>
    %10 = arith.mulf %6, %9 : vector<1x16xf32>
    %cst_8 = arith.constant 1.000000e+30 : f32
    %11 = vector.broadcast %cst_8 : f32 to vector<1x16xf32>
    %12 = arith.mulf %11, %7 : vector<1x16xf32>
    %13 = arith.subf %10, %12 : vector<1x16xf32>
    %c0_9 = arith.constant 0 : index
    %c0_10 = arith.constant 0 : index
    %14 = vector.load %arg5[%c0_9, %c0_10] : memref<1x16xf32, #tpu.memory_space<vmem>>, vector<1x16xf32>
    tpu.vector_store %arg5[%c0_9, %c0_10], %13 {strides = array<i32>} : memref<1x16xf32, #tpu.memory_space<vmem>>, vector<1x16xf32>,
    return
  }
  func.func @transform_0(%arg0: i32) -> (i32, i32) {
    %c0_i32 = arith.constant 0 : i32
    %c0_i32_0 = arith.constant 0 : i32
    return %arg0, %c0_i32 : i32, i32
  }
  func.func @transform_1(%arg0: i32) -> (i32, i32) {
    %c0_i32 = arith.constant 0 : i32
    %c0_i32_0 = arith.constant 0 : i32
    %c0_i32_1 = arith.constant 0 : i32
    return %c0_i32, %c0_i32_0 : i32, i32
  }
  func.func @transform_2(%arg0: i32) -> (i32, i32) {
    %c0_i32 = arith.constant 0 : i32
    %c0_i32_0 = arith.constant 0 : i32
    %c0_i32_1 = arith.constant 0 : i32
    return %c0_i32, %c0_i32_0 : i32, i32
  }
  func.func @transform_3(%arg0: i32) -> (i32, i32) {
    %c0_i32 = arith.constant 0 : i32
    %c0_i32_0 = arith.constant 0 : i32
    return %arg0, %c0_i32 : i32, i32
  }
  func.func @transform_4(%arg0: i32) -> (i32, i32) {
    %c0_i32 = arith.constant 0 : i32
    %c0_i32_0 = arith.constant 0 : i32
    return %arg0, %c0_i32 : i32, i32
  }
}

</mosaic_0001>

<bundles_post_ra>
// kernel: tpu_custom_call.1
= control target key start
LH: loop header
LB: loop body
LE: loop exit
PB: predicated region body
PF: predicated region fallthrough
CT: control target
= control target key end

     0   :  { %s338_s0 = inlined_call_operand.hbm [shape: f32[16,32], index: 0, kind: input, shape index: {}]   ;;  %s339_s1 = inlined_call_operand.hbm [shape: f32[8,32], index: 1, kind: input, shape index: {}]   ;;  %s340_s2 = inlined_call_operand.<no memory space> [shape: f32[1,1], index: 2, kind: input, shape index: {}]   ;;  %s341_s3 = inlined_call_operand.vmem [shape: f32[1,16], index: 3, kind: input, shape index: {}]   ;;  %s342_s4 = inlined_call_operand.hbm [shape: f32[1,16], index: 4, kind: output, shape index: {}]  }
   0x1   :  { %v9_v0 = vstv %s340_s2 }
   0x2   :  { %10 = vst [vmem:[#allocation2] sm:$0x1] %v9_v0 }
   0x3   :  { %11 = vsyncpa [#allocation4], 0 }
   0x4   :  { %12 = vsyncpa [#allocation7], 0 }
   0x5   :  { %13 = vsyncpa [#allocation5], 0  ;;  %s262_s17 = smov [#allocation3]   ;;  %s190_s21 = scalar_lea.hbm %s338_s0, 256 }
   0x6   :  { %s19_s18 = sshll.u32 %s262_s17, 4  ;;  %p191_p0 = scmp.ne.s32.totalorder %s338_s0, %s190_s21  ;;  %s20_s18 = int_to_ptr.vmem [resolvable:$true] %s19_s18 }
   0x7   :  { %p194_p1 = scmp.lt.u32.totalorder %s190_s21, %s338_s0 }
   0x9   :  { %p196_p2 = pnand %p194_p1, %p191_p0 }
   0xb   :  { %199 = shalt.err (!%p196_p2)
}
   0xc   :  { %s200_s2 = scalar_lea.vmem %s20_s18, 256  ;;  %p205_p4 = scmp.lt.s32.totalorder %s20_s18, %s20_s18 }
   0xd   :  { %p201_p3 = scmp.ne.s32.totalorder %s20_s18, %s200_s2  ;;  %p206_p5 = scmp.lt.s32.totalorder %s200_s2, %s200_s2 }
   0xf   :  { %p207_p6 = por %p206_p5, %p205_p4 }
  0x11   :  { %p208_p7 = pnand %p207_p6, %p201_p3 }
  0x13   :  { %211 = shalt.err (!%p208_p7)
}
  0x14   :  { %s263_s26 = smov 128   ;;  %s264_s27 = smov 8  }
  0x15   :  { %25 = dma.hbm_to_vmem [thread:$0]  %s338_s0, 256, %s20_s18, [#allocation4], %s263_s26, %s263_s26, %s264_s27  }
  0x16   :  { %s265_s30 = smov [#allocation6]   ;;  %s212_s8 = scalar_lea.hbm %s339_s1, 128 }
  0x17   :  { %s32_s5 = sshll.u32 %s265_s30, 4  ;;  %p213_p8 = scmp.ne.s32.totalorder %s339_s1, %s212_s8  ;;  %s33_s5 = int_to_ptr.vmem [resolvable:$true] %s32_s5 }
  0x18   :  { %p216_p9 = scmp.lt.u32.totalorder %s212_s8, %s339_s1 }
  0x1a   :  { %p218_p10 = pnand %p216_p9, %p213_p8 }
  0x1c   :  { %221 = shalt.err (!%p218_p10)
}
  0x1d   :  { %s222_s13 = scalar_lea.vmem %s33_s5, 128  ;;  %p227_p12 = scmp.lt.s32.totalorder %s33_s5, %s33_s5 }
  0x1e   :  { %p223_p11 = scmp.ne.s32.totalorder %s33_s5, %s222_s13  ;;  %p228_p13 = scmp.lt.s32.totalorder %s222_s13, %s222_s13 }
  0x20   :  { %p229_p0 = por %p228_p13, %p227_p12 }
  0x22   :  { %p230_p1 = pnand %p229_p0, %p223_p11 }
  0x24   :  { %233 = shalt.err (!%p230_p1)
}
  0x25   :  { %35 = dma.hbm_to_vmem [thread:$0]  %s339_s1, 128, %s33_s5, [#allocation7]  }
  0x26   :  { %256 = dma.done.wait [#allocation4], 256  }
  0x27   :  { %257 = vsyncadd [#allocation4], 4294967040 }
  0x28   :  { %258 = dma.done.wait [#allocation7], 128  }
  0x29   :  { %259 = vsyncadd [#allocation7], 4294967168  ;;  %v266_v1 = vmov 0.0|0.0   ;;  %vm267_vm0 = vmmov 0   ;;  %v268_v2 = vmov 0.0   ;;  %v269_v3 = vmov 0  }
  0x2a   :  { %176 = vmatprep.subr.bf16.mxu0 %v266_v1  ;;  %173 = vmatprep.mubr.msk.f32.mxu0 %vm267_vm0, %v268_v2  ;;  %vm49_vm1 = vcmask 261120   ;;  %v47_v4 = vld [vmem:[#allocation3] sm:$0xff]  ;;  %v48_v5 = vld [vmem:[#allocation3 + $0x8] sm:$0xff]  ;;  %v129_v7 = vld [vmem:[#allocation2] sm:$0x1]  ;;  %v135_v9 = vlaneseq  ;;  %s270_s16 = smov [#allocation8]  }
  0x2b   :  { %189 = vset.pattern.permute.xlu0 %v269_v3  ;;  %vm178_vm2 = vmpackc.low %vm49_vm1, %vm49_vm1  ;;  %v177_v6 = vpack.c.bf16 %v48_v5, %v47_v4  ;;  %v46_v8 = vld [vmem:[#allocation6] sm:$0xff]  ;;  %v140_v13 = vld [vmem:[%s341_s3] sm:$0x1]  ;;  %s153_s17 = sshll.u32 %s270_s16, 4  ;;  %vm145_vm3 = vcmask 122880   ;;  %s154_s17 = int_to_ptr.vmem [resolvable:$true] %s153_s17 }
  0x2c   :  { %132 = vperm.xlu0 %189, %v129_v7   ;;  %v136_v10 = vshrl.u32 %v135_v9, 7  ;;  %v141_v15 = vsub.f32 1.0, %v140_v13  ;;  %v143_v18 = vmul.f32 1e+30, %v140_v13  ;;  %s234_s18 = scalar_lea.vmem %s154_s17, 16  ;;  %s238_s19 = scalar_lea.vmem %s154_s17, 32 }
  0x2d   :  { %179 = vmatpush3.bf16.xpose.msk.msra.mxu0 %vm178_vm2, %v177_v6  ;;  %p235_p2 = scmp.ne.s32.totalorder %s154_s17, %s234_s18  ;;  %p239_p3 = scmp.lt.s32.totalorder %s154_s17, %s154_s17 }
  0x2e   :  { %v137_v11 = vsub.s32 0, %v136_v10  ;;  %p240_p4 = scmp.lt.s32.totalorder %s238_s19, %s234_s18 }
  0x30   :  { %p241_p5 = por %p240_p4, %p239_p3 }
  0x32   :  { %p242_p6 = pnand %p241_p5, %p235_p2 }
  0x34   :  { %174 = vmatmul.mubr.msk.f32.vlgmr.msra.gmra.mrb[0].mxu0 %vm49_vm1, %v46_v8 }
  0xab   :  { %v133_v12 = vpop.permute.xlu0 %132 }
  0xac   :  { %v138_v14 = vrot.slane %v133_v12, %v137_v11 }
 0x107   :  { %v125_v16 = vpop.f32.mrb[0].mxu0 }
 0x108   :  { %v139_v17 = vadd.f32 %v138_v14, %v125_v16  ;;  %v175_v19 = vpop.f32.mrb[1].mxu0 }
 0x10a   :  { %v142_v20 = vmul.f32 %v141_v15, %v139_v17 }
 0x10c   :  { %v144_v21 = vsub.f32 %v142_v20, %v143_v18 }
 0x10e   :  { %146 = vst.msk [vmem:[#allocation8] sm:$0x1] %vm145_vm3, %v144_v21 }
 0x10f   :  { %245 = shalt.err (!%p242_p6)
}
 0x110   :  { %s246_s21 = scalar_lea.hbm %s342_s4, 16 }
 0x111   :  { %p247_p7 = scmp.ne.s32.totalorder %s342_s4, %s246_s21  ;;  %p250_p8 = scmp.lt.u32.totalorder %s246_s21, %s342_s4 }
 0x113   :  { %p252_p9 = pnand %p250_p8, %p247_p7 }
 0x115   :  { %255 = shalt.err (!%p252_p9)
}
 0x116   :  { %156 = dma.vmem_to_hbm [thread:$0]  %s154_s17, 16, %s342_s4, [#allocation5]  }
 0x117   :  { %260 = dma.done.wait [#allocation5], 16  }
 0x118   :  { %261 = vsyncadd [#allocation5], 4294967280 }
 0x119   :  { %160 = vsyncpa [#allocation4], 1 }
 0x11a   :  { %161 = vsyncpa [#allocation7], 1 }
 0x11b   :  { %162 = vsyncpa [#allocation5], 1 }

</bundles_post_ra>
